<compile_context>
chip_gen: v6e
topology: v6e:2x2x1
jax: 0.10.0
libtpu: 0.0.40
codegen_flags: <defaults>
</compile_context>

<pallas_src>
import functools

import jax
import jax.numpy as jnp
from jax.experimental import pallas as pl
from jax.experimental.pallas import tpu as pltpu

IMG_C = 64                     # img_channels
COST_C = 128                   # cost_channels
REDUCTION = 16
TOT_C = IMG_C + COST_C         # 192
MID_C = TOT_C // REDUCTION     # 12

_MAX_TILE_HW = 1024            # multiple of 128; ~0.5 MiB per 128-ch f32 tile
_VMEM_LIMIT = 32 * 1024 * 1024


# ----------------------------- Phase 1: pool + fc1/relu/fc2/sigmoid ----------

def _attn_pool_kernel(img_ref, cost_ref, w1_ref, w2_ref, attn_ref,
                      acc_img_ref, acc_cost_ref, *, inv_hw):
    # img_ref : (1, IMG_C, T)    cost_ref: (1, COST_C, T)
    # w1_ref  : (MID_C, TOT_C)   w2_ref  : (COST_C, MID_C)
    # attn_ref: (1, COST_C, 1)   scratch : (IMG_C,1), (COST_C,1) f32
    hw_i = pl.program_id(1)

    @pl.when(hw_i == 0)
    def _init():
        acc_img_ref[...] = jnp.zeros_like(acc_img_ref)
        acc_cost_ref[...] = jnp.zeros_like(acc_cost_ref)

    # Explicit f32 accumulation of the spatial sums (safe for bf16 inputs).
    img = img_ref[0].astype(jnp.float32)          # (IMG_C, T)
    cost = cost_ref[0].astype(jnp.float32)        # (COST_C, T)
    acc_img_ref[...] += jnp.sum(img, axis=-1, keepdims=True)
    acc_cost_ref[...] += jnp.sum(cost, axis=-1, keepdims=True)

    @pl.when(hw_i == pl.num_programs(1) - 1)
    def _finalize():
        # inv_hw uses the TRUE (unpadded) H*W; padded zeros add nothing to sums.
        pool_img = acc_img_ref[...] * inv_hw      # (IMG_C, 1)
        pool_cost = acc_cost_ref[...] * inv_hw    # (COST_C, 1)
        # fc1: split the weight along channels to avoid an in-kernel concat.
        # These tiny matmuls run ONCE per batch (finalize only), not per tile.
        w1 = w1_ref[...]                          # (MID_C, TOT_C)
        h = (jnp.dot(w1[:, :IMG_C], pool_img, preferred_element_type=jnp.float32)
             + jnp.dot(w1[:, IMG_C:], pool_cost, preferred_element_type=jnp.float32))
        h = jnp.maximum(h, 0.0)                   # ReLU, (MID_C, 1)
        a = jnp.dot(w2_ref[...], h, preferred_element_type=jnp.float32)  # (COST_C, 1)
        attn_ref[0] = jax.nn.sigmoid(a)           # f32, (COST_C, 1)


# ----------------------------- Phase 2: out = cost * attn --------------------

def _scale_kernel(attn_ref, cost_ref, out_ref):
    # attn_ref: (1, COST_C, 1) f32; cost_ref/out_ref: (1, COST_C, T)
    attn = attn_ref[0].astype(out_ref.dtype)      # keep the big multiply in input dtype
    out_ref[0] = cost_ref[0] * attn


# ----------------------------- Wrapper ---------------------------------------

def _pick_tile(hw_pad):
    """Largest multiple of 128 dividing hw_pad, capped at _MAX_TILE_HW."""
    for k in range(min(_MAX_TILE_HW, hw_pad) // 128, 0, -1):
        t = 128 * k
        if hw_pad % t == 0:
            return t
    return 128


def channel_attention(img_features, cost_volume, w1, w2):
    """img_features: (B, IMG_C, H, W); cost_volume: (B, COST_C, H, W) -> (B, COST_C, H, W)"""
    B, Ci, H, W = img_features.shape
    _, Cc, _, _ = cost_volume.shape
    assert Ci == IMG_C and Cc == COST_C
    HW = H * W

    # Pad HW up to a multiple of 128 so every block is lane-dense.
    HW_pad = pl.cdiv(HW, 128) * 128
    tile = _pick_tile(HW_pad)
    n_hw = HW_pad // tile

    img_flat = img_features.reshape(B, Ci, HW)
    cost_flat = cost_volume.reshape(B, Cc, HW)
    if HW_pad != HW:
        pad = ((0, 0), (0, 0), (0, HW_pad - HW))
        img_flat = jnp.pad(img_flat, pad)
        cost_flat = jnp.pad(cost_flat, pad)

    # --- Phase 1: pooled sums + fc1/relu/fc2/sigmoid -> attn (B, COST_C, 1) ---
    attn = pl.pallas_call(
        functools.partial(_attn_pool_kernel, inv_hw=1.0 / float(HW)),
        out_shape=jax.ShapeDtypeStruct((B, Cc, 1), jnp.float32),
        grid_spec=pltpu.PrefetchScalarGridSpec(
            num_scalar_prefetch=0,
            grid=(B, n_hw),
            in_specs=[
                pl.BlockSpec((1, Ci, tile), lambda b, t: (b, 0, t)),
                pl.BlockSpec((1, Cc, tile), lambda b, t: (b, 0, t)),
                pl.BlockSpec((MID_C, TOT_C), lambda b, t: (0, 0)),
                pl.BlockSpec((Cc, MID_C), lambda b, t: (0, 0)),
            ],
            out_specs=pl.BlockSpec((1, Cc, 1), lambda b, t: (b, 0, 0)),
            scratch_shapes=[
                pltpu.VMEM((Ci, 1), jnp.float32),
                pltpu.VMEM((Cc, 1), jnp.float32),
            ],
        ),
        compiler_params=pltpu.CompilerParams(
            dimension_semantics=("parallel", "arbitrary"),
            vmem_limit_bytes=_VMEM_LIMIT),
    )(img_flat, cost_flat, w1, w2)

    # --- Phase 2: out = cost * attn (lane-dense, fully parallel) --------------
    # TODO(synk): if the caller can donate cost_volume, add
    #             input_output_aliases={1: 0} here to reuse its HBM buffer.
    out = pl.pallas_call(
        _scale_kernel,
        out_shape=jax.ShapeDtypeStruct((B, Cc, HW_pad), cost_volume.dtype),
        grid_spec=pltpu.PrefetchScalarGridSpec(
            num_scalar_prefetch=0,
            grid=(B, n_hw),
            in_specs=[
                pl.BlockSpec((1, Cc, 1), lambda b, t: (b, 0, 0)),
                pl.BlockSpec((1, Cc, tile), lambda b, t: (b, 0, t)),
            ],
            out_specs=pl.BlockSpec((1, Cc, tile), lambda b, t: (b, 0, t)),
        ),
        compiler_params=pltpu.CompilerParams(
            dimension_semantics=("parallel", "parallel"),
            vmem_limit_bytes=_VMEM_LIMIT),
    )(attn, cost_flat)

    if HW_pad != HW:
        out = out[:, :, :HW]
    return out.reshape(B, Cc, H, W)


# ----------------------------- Reference & test -------------------------------

def reference(img_features, cost_volume, w1, w2):
    combined = jnp.concatenate([img_features, cost_volume], axis=1)   # (B,192,H,W)
    pool = jnp.mean(combined, axis=(2, 3))                            # (B,192)
    h = jnp.maximum(pool @ w1.T, 0.0)                                 # (B,12)
    attn = jax.nn.sigmoid(h @ w2.T)                                   # (B,128)
    return cost_volume * attn[:, :, None, None]


if __name__ == "__main__":
    key = jax.random.PRNGKey(0)
    k1, k2, k3, k4, k5, k6 = jax.random.split(key, 6)

    # Deterministic weights mimicking PyTorch Conv2d default init (1x1, no bias).
    b1 = 1.0 / jnp.sqrt(float(TOT_C))
    b2 = 1.0 / jnp.sqrt(float(MID_C))
    w1 = jax.random.uniform(k3, (MID_C, TOT_C), minval=-b1, maxval=b1, dtype=jnp.float32)
    w2 = jax.random.uniform(k4, (COST_C, MID_C), minval=-b2, maxval=b2, dtype=jnp.float32)

    # Test 1: 128-aligned spatial size.
    B, H, W = 2, 16, 16
    img_features = jax.random.uniform(k1, (B, IMG_C, H, W), dtype=jnp.float32)
    cost_volume = jax.random.uniform(k2, (B, COST_C, H, W), dtype=jnp.float32)
    out = channel_attention(img_features, cost_volume, w1, w2)
    jax.block_until_ready(out)
    ref = reference(img_features, cost_volume, w1, w2)
    assert out.shape == (B, COST_C, H, W)
    assert jnp.allclose(out, ref, atol=1e-5, rtol=1e-5), "mismatch vs reference (16x16)"

    # Test 2: non-128-multiple spatial size (exercises the padding path).
    B2, H2, W2 = 1, 10, 10
    img2 = jax.random.uniform(k5, (B2, IMG_C, H2, W2), dtype=jnp.float32)
    cost2 = jax.random.uniform(k6, (B2, COST_C, H2, W2), dtype=jnp.float32)
    out2 = channel_attention(img2, cost2, w1, w2)
    jax.block_until_ready(out2)
    ref2 = reference(img2, cost2, w1, w2)
    assert out2.shape == (B2, COST_C, H2, W2)
    assert jnp.allclose(out2, ref2, atol=1e-5, rtol=1e-5), "mismatch vs reference (10x10)"

    print("KERNEL_OK")
</pallas_src>

<mosaic_0001>
module attributes {stable_mosaic.version = 11 : i64} {
  func.func @_attn_pool_kernel(%arg0: i32, %arg1: i32, %arg2: memref<1x64x256xf32, #tpu.memory_space<vmem>>, %arg3: memref<1x128x256xf32, #tpu.memory_space<vmem>>, %arg4: memref<12x192xf32, #tpu.memory_space<vmem>>, %arg5: memref<128x12xf32, #tpu.memory_space<vmem>>, %arg6: memref<1x128x1xf32, #tpu.memory_space<vmem>>, %arg7: memref<64x1xf32, #tpu.memory_space<vmem>>, %arg8: memref<128x1xf32, #tpu.memory_space<vmem>>) attributes {dimension_semantics = [#tpu.dimension_semantics<parallel>, #tpu.dimension_semantics<arbitrary>], iteration_bounds = array<i64: 2, 1>, scalar_prefetch = 0 : i64, scratch_operands = 2 : i64, tpu.core_type = #tpu.core_type<tc>, window_params = [{transform_indices = @transform_0, window_bounds = array<i64: 1, 64, 256>}, {transform_indices = @transform_1, window_bounds = array<i64: 1, 128, 256>}, {pipeline_mode = #tpu.pipeline_mode<synchronous>, transform_indices = @transform_2, window_bounds = array<i64: 12, 192>}, {pipeline_mode = #tpu.pipeline_mode<synchronous>, transform_indices = @transform_3, window_bounds = array<i64: 128, 12>}, {transform_indices = @transform_4, window_bounds = array<i64: 1, 128, 1>}]} {
    %c0_i32 = arith.constant 0 : i32
    %0 = arith.cmpi eq, %arg1, %c0_i32 : i32
    %1 = arith.extui %0 : i1 to i32
    %c0_i32_0 = arith.constant 0 : i32
    %2 = arith.cmpi ne, %1, %c0_i32_0 : i32
    scf.if %2 {
      %cst_17 = arith.constant 0.000000e+00 : f32
      %20 = vector.broadcast %cst_17 : f32 to vector<64x1xf32>
      %c0_18 = arith.constant 0 : index
      %c0_19 = arith.constant 0 : index
      %21 = vector.load %arg7[%c0_18, %c0_19] : memref<64x1xf32, #tpu.memory_space<vmem>>, vector<64x1xf32>
      tpu.vector_store %arg7[%c0_18, %c0_19], %20 {strides = array<i32>} : memref<64x1xf32, #tpu.memory_space<vmem>>, vector<64x1xf32>,
      %cst_20 = arith.constant 0.000000e+00 : f32
      %22 = vector.broadcast %cst_20 : f32 to vector<128x1xf32>
      %c0_21 = arith.constant 0 : index
      %c0_22 = arith.constant 0 : index
      %23 = vector.load %arg8[%c0_21, %c0_22] : memref<128x1xf32, #tpu.memory_space<vmem>>, vector<128x1xf32>
      tpu.vector_store %arg8[%c0_21, %c0_22], %22 {strides = array<i32>} : memref<128x1xf32, #tpu.memory_space<vmem>>, vector<128x1xf32>,
    } else {
    }
    %c0 = arith.constant 0 : index
    %c0_1 = arith.constant 0 : index
    %c0_2 = arith.constant 0 : index
    %3 = vector.load %arg2[%c0, %c0_1, %c0_2] : memref<1x64x256xf32, #tpu.memory_space<vmem>>, vector<1x64x256xf32>
    %4 = vector.shape_cast %3 : vector<1x64x256xf32> to vector<64x256xf32>
    %c0_3 = arith.constant 0 : index
    %c0_4 = arith.constant 0 : index
    %c0_5 = arith.constant 0 : index
    %5 = vector.load %arg3[%c0_3, %c0_4, %c0_5] : memref<1x128x256xf32, #tpu.memory_space<vmem>>, vector<1x128x256xf32>
    %6 = vector.shape_cast %5 : vector<1x128x256xf32> to vector<128x256xf32>
    %c0_6 = arith.constant 0 : index
    %c0_7 = arith.constant 0 : index
    %7 = vector.load %arg7[%c0_6, %c0_7] : memref<64x1xf32, #tpu.memory_space<vmem>>, vector<64x1xf32>
    %cst = arith.constant dense<0.000000e+00> : vector<64xf32>
    %8 = vector.multi_reduction <add>, %4, %cst [1] : vector<64x256xf32> to vector<64xf32>
    %9 = vector.shape_cast %8 : vector<64xf32> to vector<64x1xf32>
    %10 = arith.addf %7, %9 : vector<64x1xf32>
    %c0_8 = arith.constant 0 : index
    %c0_9 = arith.constant 0 : index
    %11 = vector.load %arg7[%c0_8, %c0_9] : memref<64x1xf32, #tpu.memory_space<vmem>>, vector<64x1xf32>
    tpu.vector_store %arg7[%c0_8, %c0_9], %10 {strides = array<i32>} : memref<64x1xf32, #tpu.memory_space<vmem>>, vector<64x1xf32>,
    %c0_10 = arith.constant 0 : index
    %c0_11 = arith.constant 0 : index
    %12 = vector.load %arg8[%c0_10, %c0_11] : memref<128x1xf32, #tpu.memory_space<vmem>>, vector<128x1xf32>
    %cst_12 = arith.constant dense<0.000000e+00> : vector<128xf32>
    %13 = vector.multi_reduction <add>, %6, %cst_12 [1] : vector<128x256xf32> to vector<128xf32>
    %14 = vector.shape_cast %13 : vector<128xf32> to vector<128x1xf32>
    %15 = arith.addf %12, %14 : vector<128x1xf32>
    %c0_13 = arith.constant 0 : index
    %c0_14 = arith.constant 0 : index
    %16 = vector.load %arg8[%c0_13, %c0_14] : memref<128x1xf32, #tpu.memory_space<vmem>>, vector<128x1xf32>
    tpu.vector_store %arg8[%c0_13, %c0_14], %15 {strides = array<i32>} : memref<128x1xf32, #tpu.memory_space<vmem>>, vector<128x1xf32>,
    %c0_i32_15 = arith.constant 0 : i32
    %17 = arith.cmpi eq, %arg1, %c0_i32_15 : i32
    %18 = arith.extui %17 : i1 to i32
    %c0_i32_16 = arith.constant 0 : i32
    %19 = arith.cmpi ne, %18, %c0_i32_16 : i32
    scf.if %19 {
      %c0_17 = arith.constant 0 : index
      %c0_18 = arith.constant 0 : index
      %20 = vector.load %arg7[%c0_17, %c0_18] : memref<64x1xf32, #tpu.memory_space<vmem>>, vector<64x1xf32>
      %cst_19 = arith.constant 3.906250e-03 : f32
      %21 = vector.broadcast %cst_19 : f32 to vector<64x1xf32>
      %22 = arith.mulf %20, %21 : vector<64x1xf32>
      %c0_20 = arith.constant 0 : index
      %c0_21 = arith.constant 0 : index
      %23 = vector.load %arg8[%c0_20, %c0_21] : memref<128x1xf32, #tpu.memory_space<vmem>>, vector<128x1xf32>
      %cst_22 = arith.constant 3.906250e-03 : f32
      %24 = vector.broadcast %cst_22 : f32 to vector<128x1xf32>
      %25 = arith.mulf %23, %24 : vector<128x1xf32>
      %c0_23 = arith.constant 0 : index
      %c0_24 = arith.constant 0 : index
      %26 = vector.load %arg4[%c0_23, %c0_24] : memref<12x192xf32, #tpu.memory_space<vmem>>, vector<12x192xf32>
      %27 = vector.extract_strided_slice %26 {offsets = [0, 0], sizes = [12, 64], strides = [1, 1]} : vector<12x192xf32> to vector<12x64xf32>
      %cst_25 = arith.constant dense<0.000000e+00> : vector<12x1xf32>
      %28 = tpu.matmul %27, %22, %cst_25 {dimension_numbers = #tpu.dot_dimension_numbers<[1], [0], [0], [1], [0, 0, 1, 1], [], []>} : vector<12x64xf32>, vector<64x1xf32>, vector<12x1xf32> -> vector<12x1xf32>
      %29 = vector.extract_strided_slice %26 {offsets = [0, 64], sizes = [12, 128], strides = [1, 1]} : vector<12x192xf32> to vector<12x128xf32>
      %cst_26 = arith.constant dense<0.000000e+00> : vector<12x1xf32>
      %30 = tpu.matmul %29, %25, %cst_26 {dimension_numbers = #tpu.dot_dimension_numbers<[1], [0], [0], [1], [0, 0, 1, 1], [], []>} : vector<12x128xf32>, vector<128x1xf32>, vector<12x1xf32> -> vector<12x1xf32>
      %31 = arith.addf %28, %30 : vector<12x1xf32>
      %cst_27 = arith.constant 0.000000e+00 : f32
      %32 = vector.broadcast %cst_27 : f32 to vector<12x1xf32>
      %33 = arith.maximumf %31, %32 : vector<12x1xf32>
      %c0_28 = arith.constant 0 : index
      %c0_29 = arith.constant 0 : index
      %34 = vector.load %arg5[%c0_28, %c0_29] : memref<128x12xf32, #tpu.memory_space<vmem>>, vector<128x12xf32>
      %cst_30 = arith.constant dense<0.000000e+00> : vector<128x1xf32>
      %35 = tpu.matmul %34, %33, %cst_30 {dimension_numbers = #tpu.dot_dimension_numbers<[1], [0], [0], [1], [0, 0, 1, 1], [], []>} : vector<128x12xf32>, vector<12x1xf32>, vector<128x1xf32> -> vector<128x1xf32>
      %36 = arith.negf %35 : vector<128x1xf32>
      %37 = math.exp %36 : vector<128x1xf32>
      %cst_31 = arith.constant 1.000000e+00 : f32
      %38 = vector.broadcast %cst_31 : f32 to vector<128x1xf32>
      %39 = arith.addf %38, %37 : vector<128x1xf32>
      %40 = arith.divf %38, %39 : vector<128x1xf32>
      %c0_32 = arith.constant 0 : index
      %c0_33 = arith.constant 0 : index
      %c0_34 = arith.constant 0 : index
      %41 = vector.load %arg6[%c0_32, %c0_33, %c0_34] : memref<1x128x1xf32, #tpu.memory_space<vmem>>, vector<1x128x1xf32>
      %42 = vector.shape_cast %41 : vector<1x128x1xf32> to vector<128x1xf32>
      %43 = vector.shape_cast %40 : vector<128x1xf32> to vector<1x128x1xf32>
      tpu.vector_store %arg6[%c0_32, %c0_33, %c0_34], %43 {strides = array<i32>} : memref<1x128x1xf32, #tpu.memory_space<vmem>>, vector<1x128x1xf32>,
    } else {
    }
    return
  }
  func.func @transform_0(%arg0: i32, %arg1: i32) -> (i32, i32, i32) {
    %c0_i32 = arith.constant 0 : i32
    %c0_i32_0 = arith.constant 0 : i32
    return %arg0, %c0_i32, %arg1 : i32, i32, i32
  }
  func.func @transform_1(%arg0: i32, %arg1: i32) -> (i32, i32, i32) {
    %c0_i32 = arith.constant 0 : i32
    %c0_i32_0 = arith.constant 0 : i32
    return %arg0, %c0_i32, %arg1 : i32, i32, i32
  }
  func.func @transform_2(%arg0: i32, %arg1: i32) -> (i32, i32) {
    %c0_i32 = arith.constant 0 : i32
    %c0_i32_0 = arith.constant 0 : i32
    %c0_i32_1 = arith.constant 0 : i32
    return %c0_i32, %c0_i32_0 : i32, i32
  }
  func.func @transform_3(%arg0: i32, %arg1: i32) -> (i32, i32) {
    %c0_i32 = arith.constant 0 : i32
    %c0_i32_0 = arith.constant 0 : i32
    %c0_i32_1 = arith.constant 0 : i32
    return %c0_i32, %c0_i32_0 : i32, i32
  }
  func.func @transform_4(%arg0: i32, %arg1: i32) -> (i32, i32, i32) {
    %c0_i32 = arith.constant 0 : i32
    %c0_i32_0 = arith.constant 0 : i32
    %c0_i32_1 = arith.constant 0 : i32
    return %arg0, %c0_i32, %c0_i32_0 : i32, i32, i32
  }
}

</mosaic_0001>

<bundles_post_ra>
// kernel: tpu_custom_call.1
= control target key start
LH: loop header
LB: loop body
LE: loop exit
PB: predicated region body
PF: predicated region fallthrough
CT: control target
= control target key end

     0   :  { %9 = vsyncpa [#allocation5], 0  ;;  %s1976_s0 = inlined_call_operand.hbm [shape: f32[2,64,256], index: 0, kind: input, shape index: {}]   ;;  %s1977_s1 = inlined_call_operand.hbm [shape: f32[2,128,256], index: 1, kind: input, shape index: {}]   ;;  %s1978_s2 = inlined_call_operand.vmem [shape: f32[12,192], index: 2, kind: input, shape index: {}]   ;;  %s1979_s3 = inlined_call_operand.vmem [shape: f32[128,12], index: 3, kind: input, shape index: {}]   ;;  %s1980_s4 = inlined_call_operand.vmem [shape: f32[2,128,1], index: 4, kind: output, shape index: {}]  }
   0x1   :  { %11 = vsyncpa [#allocation5 + $0x1], 0 }
   0x2   :  { %12 = vsyncpa [#allocation7], 0 }
   0x3   :  { %14 = vsyncpa [#allocation7 + $0x1], 0  ;;  %s1628_s15 = smov 0   ;;  %s1630_s16 = smov 0  }
   0x4   :  { %s1632_s17 = smov 0   ;;  %s1634_s18 = smov 0  }
   0x5   :  { %s1636_s19 = smov 0   ;;  %s1638_s20 = smov 0  }
   0x6 LB: > { %s1160_s21 = sadd.s32 4294967295, %s1595_s20   ;;  %s32_s22 = sadd.s32 1, %s1591_s19  ;;  %s1595_s20 = sphi %s1638_s20, %s20_s20   ;;  %s1591_s19 = sphi %s1636_s19, %s1989_s19   ;;  %s1587_s18 = sphi %s1634_s18, %s1988_s18   ;;  %s1583_s17 = sphi %s1632_s17, %s1987_s17   ;;  %s1579_s16 = sphi %s1630_s16, %s1986_s16   ;;  %s1575_s15 = sphi %s1628_s15, %s1985_s15  }
   0x7   : > { %p34_p0 = scmp.ge.s32.totalorder %s32_s22, 2  ;;  %s41_s23 = sadd.s32 1, %s1583_s17 }
   0x8   : > { %p48_p1 = scmp.ne.s32.totalorder %s1583_s17, %s1579_s16  ;;  %p49_p2 = scmp.eq.s32.totalorder %s1595_s20, 0 }
   0x9   : > { %s1991_s22 = smov (%p34_p0, %s32_s22), 0  ;;  %p54_p4 = scmp.ne.s32.totalorder %s1579_s16, %s1575_s15 }
   0xa   : > { %p1664_p3 = por %p49_p2, %p48_p1  ;;  %s36_s25 = ssub.s32 %s1591_s19, %s1991_s22 }
   0xb   : > { %p55_p5 = scmp.eq.s32.totalorder %s1160_s21, 0  ;;  %p39_p6 = scmp.eq.s32.totalorder %s36_s25, 0 }
   0xc   : > { %p1358_p8 = scmp.lt.s32.totalorder %s1595_s20, 2  ;;  %s1680_s28 = sand.u32 1, %s1583_s17  }
   0xd   : > { %p1671_p7 = por %p55_p5, %p54_p4  ;;  %s1212_s29 = sshll.u32 %s1591_s19, 11 }
   0xe   : > { %s1677_s27 = scalar_select %p39_p6, %s1583_s17, %s41_s23  }
   0xf   : > { %s1164_s30 = sshll.u32 %s1680_s28, 7  ;;  %s192_s7 = scalar_lea.hbm %s1976_s0, %s1212_s29 }
  0x10   : > { %s184_s8 = scalar_lea.vmem [#allocation4], %s1164_s30  ;;  %p1689_p9 = pnand %p1358_p8, %p1664_p3 }
  0x11   : > { %s193_s9 = sshll.u32 %s184_s8, 4  ;;  %s181_s11 = scalar_lea.sflag [#allocation5], %s1680_s28  ;;  %s194_s9 = int_to_ptr.vmem [resolvable:$true] %s193_s9 }
  0x12   : > { %p1487_p10 = pneg %p1689_p9  ;;  %s1498_s12 = scalar_lea.vmem %s194_s9, 2048 }
  0x13   : > { %p1499_p11 = scmp.ne.s32.totalorder %s194_s9, %s1498_s12  ;;  %s1597_s13 = smov [#allocation4]  }
  0x14   : > { %s1503_s14 = sshll.u32 %s1597_s13, 4  ;;  %s1504_s14 = int_to_ptr.vmem [resolvable:$false] %s1503_s14 }
  0x15   : > { %p1501_p12 = pnand %p1499_p11, %p1487_p10  ;;  %s1505_s15 = scalar_lea.vmem %s1504_s14, 4096 }
  0x16   : > { %p1506_p0 = scmp.lt.s32.totalorder %s194_s9, %s1504_s14  ;;  %p1507_p1 = scmp.lt.s32.totalorder %s1505_s15, %s1498_s12 }
  0x17   : > { %p1502_p13 = pneg %p1501_p12 }
  0x18   : > { %p1508_p2 = por %p1507_p1, %p1506_p0 }
  0x1a   : > { %p1509_p3 = pnand %p1508_p2, %p1502_p13 }
  0x1c   : > { %1512 = shalt.err (!%p1509_p3)
}
  0x1d   : > { %s1598_s21 = smov 256   ;;  %s1599_s23 = smov 16  }
  0x1e   : > { %1354 = dma.hbm_to_vmem [thread:$0]  (!%p1689_p9), %s192_s7, 2048, %s194_s9, %s181_s11, %s1598_s21, %s1598_s21, %s1599_s23  }
  0x1f   : > { %p1170_p4 = scmp.ge.s32.totalorder %s1595_s20, 1  ;;  %p224_p5 = scmp.lt.s32.totalorder %s1595_s20, 3 }
  0x20   : > { %s1167_s24 = sshll.u32 %s1680_s28, 8  ;;  %s1213_s29 = sshll.u32 %s1591_s19, 12 }
  0x21   : > { %p1707_p6 = pnand %p1170_p4, %p224_p5  ;;  %s207_s30 = scalar_lea.vmem [#allocation6], %s1167_s24 }
  0x22   : > { %s216_s5 = sshll.u32 %s207_s30, 4  ;;  %s215_s12 = scalar_lea.hbm %s1977_s1, %s1213_s29  ;;  %s217_s5 = int_to_ptr.vmem [resolvable:$true] %s216_s5 }
  0x23   : > { %s204_s13 = scalar_lea.sflag [#allocation7], %s1680_s28  ;;  %s1526_s14 = scalar_lea.vmem %s217_s5, 4096 }
  0x24   : > { %p1527_p8 = scmp.ne.s32.totalorder %s217_s5, %s1526_s14  ;;  %s1600_s7 = smov [#allocation6]  }
  0x25   : > { %s1531_s9 = sshll.u32 %s1600_s7, 4  ;;  %s1532_s9 = int_to_ptr.vmem [resolvable:$false] %s1531_s9 }
  0x26   : > { %p1529_p11 = pnand %p1527_p8, %p1487_p10  ;;  %s1533_s11 = scalar_lea.vmem %s1532_s9, 8192 }
  0x27   : > { %p1534_p13 = scmp.lt.s32.totalorder %s217_s5, %s1532_s9  ;;  %p1535_p0 = scmp.lt.s32.totalorder %s1533_s11, %s1526_s14 }
  0x28   : > { %p1530_p12 = pneg %p1529_p11 }
  0x29   : > { %p1536_p1 = por %p1535_p0, %p1534_p13 }
  0x2b   : > { %p1537_p2 = pnand %p1536_p1, %p1530_p12 }
  0x2d   : > { %1540 = shalt.err (!%p1537_p2)
}
  0x2e   : > { %1357 = dma.hbm_to_vmem [thread:$0]  (!%p1689_p9), %s215_s12, 4096, %s217_s5, %s204_s13, %s1598_s21, %s1598_s21, %s1599_s23  }
  0x2f   : > { %228 = sbr.rel (%p1707_p6) target bundleno = 714 (0x2ca), region = 36  ;;  %s230_s28 = sand.u32 (!%p1707_p6), 1, %s1579_s16  }
  0x30   : > { %s1171_s15 = sshll.u32 (!%p1707_p6), %s230_s28, 7  ;;  %s231_s24 = scalar_lea.sflag (!%p1707_p6), [#allocation5], %s230_s28 }
  0x31   : > { %s1727_s29 = scalar_lea.vmem (!%p1707_p6), [#allocation4], %s1171_s15 }
  0x34   : > { %1566 = dma.done.wait (%p1671_p7), %s231_s24, 2048  }
  0x35   : > { %1568 = vsyncadd (%p1671_p7), %s231_s24, 4294965248  ;;  %s1172_s10 = sshll.u32 %s230_s28, 8  ;;  %s240_s30 = scalar_lea.sflag [#allocation7], %s230_s28 }
  0x36   : > { %s1733_s6 = scalar_lea.vmem [#allocation6], %s1172_s10 }
  0x37   : > { %1570 = dma.done.wait (%p1671_p7), %s240_s30, 4096  }
  0x38   : > { %1572 = vsyncadd (%p1671_p7), %s240_s30, 4294963200  ;;  %vm284_vm0 = vcmask 7168   ;;  %v1601_v0 = vmov 0.0   ;;  %v355_v1 = vld [vmem:[%s1733_s6 + $0xf0] sm:$0xff]  ;;  %v356_v2 = vld [vmem:[%s1733_s6 + $0xf8] sm:$0xff]  ;;  %s1602_s14 = smov 64  }
  0x39   : > { %308 = vst.msk [vmem:[#allocation3 + $0x78] sm:$0xff] %vm284_vm0, %v1601_v0  ;;  %285 = vst.msk [vmem:[#allocation2] sm:$0xff] %vm284_vm0, %v1601_v0  ;;  %v351_v3 = vld [vmem:[%s1733_s6 + $0xd0] sm:$0xff]  ;;  %v467_v4 = vadd.f32 %v356_v2, %v355_v1  ;;  %v352_v5 = vld [vmem:[%s1733_s6 + $0xd8] sm:$0xff]  ;;  %vm569_vm1 = vcmask 523264   ;;  %vm746_vm2 = vcmask 97280  }
  0x3a   : > { %286 = vst.msk [vmem:[#allocation2 + $0x8] sm:$0xff] %vm284_vm0, %v1601_v0  ;;  %287 = vst.msk [vmem:[#allocation2 + $0x10] sm:$0xff] %vm284_vm0, %v1601_v0  ;;  %v353_v6 = vld [vmem:[%s1733_s6 + $0xe0] sm:$0xff]  ;;  %v354_v7 = vld [vmem:[%s1733_s6 + $0xe8] sm:$0xff]  ;;  %v461_v8 = vadd.f32 %v352_v5, %v351_v3  ;;  %vm795_vm3 = vcmask 1043456   ;;  %p275_p7 = scmp.lt.s32.totalorder %s1587_s18, 1 }
  0x3b   : > { %288 = vst.msk [vmem:[#allocation2 + $0x18] sm:$0xff] %vm284_vm0, %v1601_v0  ;;  %289 = vst.msk [vmem:[#allocation2 + $0x20] sm:$0xff] %vm284_vm0, %v1601_v0  ;;  %v349_v9 = vld [vmem:[%s1733_s6 + $0xc0] sm:$0xff]  ;;  %v350_v10 = vld [vmem:[%s1733_s6 + $0xc8] sm:$0xff]  ;;  %468 = vadd.xlane.f32.xlu0 %v467_v4  ;;  %v464_v11 = vadd.f32 %v354_v7, %v353_v6 }
  0x3c   : > { %290 = vst.msk [vmem:[#allocation2 + $0x28] sm:$0xff] %vm284_vm0, %v1601_v0  ;;  %291 = vst.msk [vmem:[#allocation2 + $0x30] sm:$0xff] %vm284_vm0, %v1601_v0  ;;  %462 = vadd.xlane.f32.xlu1 %v461_v8  ;;  %v458_v12 = vadd.f32 %v350_v10, %v349_v9  ;;  %v347_v13 = vld [vmem:[%s1733_s6 + $0xb0] sm:$0xff]  ;;  %v348_v14 = vld [vmem:[%s1733_s6 + $0xb8] sm:$0xff]  ;;  %s1993_s18 = smov (!%p275_p7, %s1587_s18), 1 }
  0x3d   : > { %292 = vst.msk [vmem:[#allocation2 + $0x38] sm:$0xff] %vm284_vm0, %v1601_v0  ;;  %293 = vst.msk [vmem:[#allocation3] sm:$0xff] %vm284_vm0, %v1601_v0  ;;  %v345_v15 = vld [vmem:[%s1733_s6 + $0xa0] sm:$0xff]  ;;  %v346_v16 = vld [vmem:[%s1733_s6 + $0xa8] sm:$0xff]  ;;  %v455_v17 = vadd.f32 %v348_v14, %v347_v13  ;;  %s1214_s25 = sshll.u32 %s1993_s18, 7 }
  0x3e   : > { %294 = vst.msk [vmem:[#allocation3 + $0x8] sm:$0xff] %vm284_vm0, %v1601_v0  ;;  %295 = vst.msk [vmem:[#allocation3 + $0x10] sm:$0xff] %vm284_vm0, %v1601_v0  ;;  %v452_v18 = vadd.f32 %v346_v16, %v345_v15  ;;  %v343_v19 = vld [vmem:[%s1733_s6 + $0x90] sm:$0xff]  ;;  %v344_v20 = vld [vmem:[%s1733_s6 + $0x98] sm:$0xff]  ;;  %s1924_s12 = scalar_lea.vmem %s1980_s4, %s1214_s25 }
  0x3f   : > { %296 = vst.msk [vmem:[#allocation3 + $0x18] sm:$0xff] %vm284_vm0, %v1601_v0  ;;  %297 = vst.msk [vmem:[#allocation3 + $0x20] sm:$0xff] %vm284_vm0, %v1601_v0  ;;  %465 = vadd.xlane.f32.xlu0 %v464_v11  ;;  %v341_v21 = vld [vmem:[%s1733_s6 + $0x80] sm:$0xff]  ;;  %v342_v22 = vld [vmem:[%s1733_s6 + $0x88] sm:$0xff]  ;;  %v449_v23 = vadd.f32 %v344_v20, %v343_v19 }
  0x40   : > { %298 = vst.msk [vmem:[#allocation3 + $0x28] sm:$0xff] %vm284_vm0, %v1601_v0  ;;  %299 = vst.msk [vmem:[#allocation3 + $0x30] sm:$0xff] %vm284_vm0, %v1601_v0  ;;  %459 = vadd.xlane.f32.xlu1 %v458_v12  ;;  %v446_v24 = vadd.f32 %v342_v22, %v341_v21  ;;  %v323_v25 = vld [vmem:[%s1727_s29 + $0x70] sm:$0xff]  ;;  %v324_v26 = vld [vmem:[%s1727_s29 + $0x78] sm:$0xff] }
  0x41   : > { %300 = vst.msk [vmem:[#allocation3 + $0x38] sm:$0xff] %vm284_vm0, %v1601_v0  ;;  %301 = vst.msk [vmem:[#allocation3 + $0x40] sm:$0xff] %vm284_vm0, %v1601_v0  ;;  %v339_v27 = vld [vmem:[%s1733_s6 + $0x70] sm:$0xff]  ;;  %v340_v28 = vld [vmem:[%s1733_s6 + $0x78] sm:$0xff]  ;;  %v386_v29 = vadd.f32 %v324_v26, %v323_v25 }
  0x42   : > { %302 = vst.msk [vmem:[#allocation3 + $0x48] sm:$0xff] %vm284_vm0, %v1601_v0  ;;  %303 = vst.msk [vmem:[#allocation3 + $0x50] sm:$0xff] %vm284_vm0, %v1601_v0  ;;  %v443_v30 = vadd.f32 %v340_v28, %v339_v27  ;;  %v321_v31 = vld [vmem:[%s1727_s29 + $0x60] sm:$0xff]  ;;  %v322_v32 = vld [vmem:[%s1727_s29 + $0x68] sm:$0xff] }
  0x43   : > { %304 = vst.msk [vmem:[#allocation3 + $0x58] sm:$0xff] %vm284_vm0, %v1601_v0  ;;  %305 = vst.msk [vmem:[#allocation3 + $0x60] sm:$0xff] %vm284_vm0, %v1601_v0  ;;  %456 = vadd.xlane.f32.xlu0 %v455_v17  ;;  %v337_v33 = vld [vmem:[%s1733_s6 + $0x60] sm:$0xff]  ;;  %v338_v34 = vld [vmem:[%s1733_s6 + $0x68] sm:$0xff]  ;;  %v383_v35 = vadd.f32 %v322_v32, %v321_v31 }
  0x44   : > { %306 = vst.msk [vmem:[#allocation3 + $0x68] sm:$0xff] %vm284_vm0, %v1601_v0  ;;  %307 = vst.msk [vmem:[#allocation3 + $0x70] sm:$0xff] %vm284_vm0, %v1601_v0  ;;  %453 = vadd.xlane.f32.xlu1 %v452_v18  ;;  %v440_v36 = vadd.f32 %v338_v34, %v337_v33  ;;  %v319_v37 = vld [vmem:[%s1727_s29 + $0x50] sm:$0xff]  ;;  %v320_v38 = vld [vmem:[%s1727_s29 + $0x58] sm:$0xff] }
  0x45   : > { %v335_v39 = vld [vmem:[%s1733_s6 + $0x50] sm:$0xff]  ;;  %v336_v40 = vld [vmem:[%s1733_s6 + $0x58] sm:$0xff]  ;;  %v380_v41 = vadd.f32 %v320_v38, %v319_v37  ;;  %v317_v43 = vld [vmem:[%s1727_s29 + $0x40] sm:$0xff] }
  0x46   : > { %v437_v42 = vadd.f32 %v336_v40, %v335_v39  ;;  %v318_v44 = vld [vmem:[%s1727_s29 + $0x48] sm:$0xff]  ;;  %v333_v45 = vld [vmem:[%s1733_s6 + $0x40] sm:$0xff]  ;;  %v315_v49 = vld [vmem:[%s1727_s29 + $0x30] sm:$0xff] }
  0x47   : > { %450 = vadd.xlane.f32.xlu0 %v449_v23  ;;  %v334_v46 = vld [vmem:[%s1733_s6 + $0x48] sm:$0xff]  ;;  %v377_v47 = vadd.f32 %v318_v44, %v317_v43  ;;  %v316_v50 = vld [vmem:[%s1727_s29 + $0x38] sm:$0xff]  ;;  %v331_v51 = vld [vmem:[%s1733_s6 + $0x30] sm:$0xff] }
  0x48   : > { %447 = vadd.xlane.f32.xlu1 %v446_v24  ;;  %v434_v48 = vadd.f32 %v334_v46, %v333_v45  ;;  %v332_v52 = vld [vmem:[%s1733_s6 + $0x38] sm:$0xff]  ;;  %v374_v53 = vadd.f32 %v316_v50, %v315_v49  ;;  %v313_v55 = vld [vmem:[%s1727_s29 + $0x20] sm:$0xff]  ;;  %v314_v56 = vld [vmem:[%s1727_s29 + $0x28] sm:$0xff] }
  0x49   : > { %v431_v54 = vadd.f32 %v332_v52, %v331_v51  ;;  %v329_v57 = vld [vmem:[%s1733_s6 + $0x20] sm:$0xff]  ;;  %v330_v58 = vld [vmem:[%s1733_s6 + $0x28] sm:$0xff]  ;;  %v371_v59 = vadd.f32 %v314_v56, %v313_v55  ;;  %v311_v61 = vld [vmem:[%s1727_s29 + $0x10] sm:$0xff] }
  0x4a   : > { %v428_v60 = vadd.f32 %v330_v58, %v329_v57  ;;  %v312_v62 = vld [vmem:[%s1727_s29 + $0x18] sm:$0xff]  ;;  %v327_v63 = vld [vmem:[%s1733_s6 + $0x10] sm:$0xff]  ;;  %v309_v3 = vld [vmem:[%s1727_s29] sm:$0xff] }
  0x4b   : > { %387 = vadd.xlane.f32.xlu0 %v386_v29  ;;  %v328_v0 = vld [vmem:[%s1733_s6 + $0x18] sm:$0xff]  ;;  %v368_v1 = vadd.f32 %v312_v62, %v311_v61  ;;  %v310_v4 = vld [vmem:[%s1727_s29 + $0x8] sm:$0xff]  ;;  %v325_v5 = vld [vmem:[%s1733_s6] sm:$0xff] }
  0x4c   : > { %444 = vadd.xlane.f32.xlu1 %v443_v30  ;;  %v425_v2 = vadd.f32 %v328_v0, %v327_v63  ;;  %v326_v6 = vld [vmem:[%s1733_s6 + $0x8] sm:$0xff]  ;;  %v365_v7 = vadd.f32 %v310_v4, %v309_v3  ;;  %v1814_v9 = vld [vmem:[%s1978_s2 + $0x10] sm:$0xf]  ;;  %v556_v10 = vld [vmem:[%s1978_s2 + $0x18] sm:$0xf] }
  0x4d   : > { %v422_v8 = vadd.f32 %v326_v6, %v325_v5  ;;  %v1416_v11 = vpack.i.bf16 %v556_v10, %v1814_v9  ;;  %v553_v12 = vld [vmem:[%s1978_s2] sm:$0xff]  ;;  %v554_v13 = vld [vmem:[%s1978_s2 + $0x8] sm:$0xff]  ;;  %v421_v15 = vld [vmem:[#allocation3 + $0x78] sm:$0xff] }
  0x4e   : > { %v1411_v14 = vpack.i.bf16 %v554_v13, %v553_v12  ;;  %1312 = vmatprep.mubr.msk.f32.mxu1 %vm569_vm1, %v553_v12  ;;  %v419_v16 = vld [vmem:[#allocation3 + $0x68] sm:$0xff]  ;;  %v420_v21 = vld [vmem:[#allocation3 + $0x70] sm:$0xff]  ;;  %v418_v22 = vld [vmem:[#allocation3 + $0x60] sm:$0xff] }
  0x4f   : > { %384 = vadd.xlane.f32.xlu0 %v383_v35  ;;  %v417_v27 = vld [vmem:[#allocation3 + $0x58] sm:$0xff]  ;;  %v416_v28 = vld [vmem:[#allocation3 + $0x50] sm:$0xff]  ;;  %v415_v33 = vld [vmem:[#allocation3 + $0x48] sm:$0xff] }
  0x50   : > { %441 = vadd.xlane.f32.xlu1 %v440_v36  ;;  %v414_v35 = vld [vmem:[#allocation3 + $0x40] sm:$0xff]  ;;  %v413_v44 = vld [vmem:[#allocation3 + $0x38] sm:$0xff]  ;;  %v363_v52 = vld [vmem:[#allocation2 + $0x30] sm:$0xff] }
  0x51   : > { %v362_v62 = vld [vmem:[#allocation2 + $0x28] sm:$0xff] }
  0x52   : > { %v411_v0 = vld [vmem:[#allocation3 + $0x28] sm:$0xff] }
  0x53   : > { %381 = vadd.xlane.f32.xlu0 %v380_v41  ;;  %v364_v41 = vld [vmem:[#allocation2 + $0x38] sm:$0xff] }
  0x54   : > { %438 = vadd.xlane.f32.xlu1 %v437_v42 }
  0x57   : > { %378 = vadd.xlane.f32.xlu0 %v377_v47 }
  0x58   : > { %435 = vadd.xlane.f32.xlu1 %v434_v48 }
  0x5b   : > { %375 = vadd.xlane.f32.xlu0 %v374_v53 }
  0x5c   : > { %432 = vadd.xlane.f32.xlu1 %v431_v54  ;;  %v412_v54 = vld [vmem:[#allocation3 + $0x30] sm:$0xff] }
  0x5f   : > { %372 = vadd.xlane.f32.xlu0 %v371_v59 }
  0x60   : > { %429 = vadd.xlane.f32.xlu1 %v428_v60 }
  0x63   : > { %369 = vadd.xlane.f32.xlu0 %v368_v1 }
  0x64   : > { %426 = vadd.xlane.f32.xlu1 %v425_v2 }
  0x67   : > { %366 = vadd.xlane.f32.xlu0 %v365_v7 }
  0x68   : > { %423 = vadd.xlane.f32.xlu1 %v422_v8  ;;  %v361_v8 = vld [vmem:[#allocation2 + $0x20] sm:$0xff] }
  0x79   : > { %1417 = vrot.lane.b32.xlu1 %v1416_v11, %s1602_s14  ;;  %v410_v11 = vld [vmem:[#allocation3 + $0x20] sm:$0xff] }
  0x7d   : > { %1412 = vrot.lane.b32.xlu0 %v1411_v14, %s1602_s14 }
  0xc4   : > { %v469_v17 = vpop.xlane.xlu0 %468 }
  0xc5   : > { %v485_v18 = vadd.f32 %v469_v17, %v421_v15  ;;  %v463_v19 = vpop.xlane.xlu1 %462 }
  0xc6   : > { %v483_v20 = vadd.f32 %v463_v19, %v419_v16 }
  0xc7   : > { %501 = vst.msk [vmem:[#allocation3 + $0x78] sm:$0xff] %vm284_vm0, %v485_v18 }
  0xc8   : > { %499 = vst.msk [vmem:[#allocation3 + $0x68] sm:$0xff] %vm284_vm0, %v483_v20  ;;  %v466_v23 = vpop.xlane.xlu0 %465  ;;  %v360_v20 = vld [vmem:[#allocation2 + $0x18] sm:$0xff] }
  0xc9   : > { %v484_v24 = vadd.f32 %v466_v23, %v420_v21  ;;  %v460_v25 = vpop.xlane.xlu1 %459 }
  0xca   : > { %v482_v26 = vadd.f32 %v460_v25, %v418_v22  ;;  %v409_v22 = vld [vmem:[#allocation3 + $0x18] sm:$0xff] }
  0xcb   : > { %500 = vst.msk [vmem:[#allocation3 + $0x70] sm:$0xff] %vm284_vm0, %v484_v24 }
  0xcc   : > { %498 = vst.msk [vmem:[#allocation3 + $0x60] sm:$0xff] %vm284_vm0, %v482_v26  ;;  %v457_v29 = vpop.xlane.xlu0 %456 }
  0xcd   : > { %v481_v30 = vadd.f32 %v457_v29, %v417_v27  ;;  %v454_v31 = vpop.xlane.xlu1 %453 }
  0xce   : > { %v480_v32 = vadd.f32 %v454_v31, %v416_v28  ;;  %v536_v34 = vld [vmem:[#allocation3 + $0x78] sm:$0xff] }
  0xcf   : > { %497 = vst.msk [vmem:[#allocation3 + $0x58] sm:$0xff] %vm284_vm0, %v481_v30  ;;  %v552_v36 = vmul.f32 0.00390625, %v536_v34  ;;  %v534_v43 = vld [vmem:[#allocation3 + $0x68] sm:$0xff]  ;;  %v359_v30 = vld [vmem:[#allocation2 + $0x10] sm:$0xff] }
  0xd0   : > { %496 = vst.msk [vmem:[#allocation3 + $0x50] sm:$0xff] %vm284_vm0, %v480_v32  ;;  %v451_v37 = vpop.xlane.xlu0 %450  ;;  %v550_v50 = vmul.f32 0.00390625, %v534_v43  ;;  %v408_v32 = vld [vmem:[#allocation3 + $0x10] sm:$0xff] }
  0xd1   : > { %v479_v38 = vadd.f32 %v451_v37, %v415_v33  ;;  %v448_v39 = vpop.xlane.xlu1 %447  ;;  %1261 = vmatprep.subr.mxu0 %v552_v36 }
  0xd2   : > { %v478_v40 = vadd.f32 %v448_v39, %v414_v35  ;;  %1262 = vmatpush3.msra.mxu0 %v552_v36  ;;  %v535_v42 = vld [vmem:[#allocation3 + $0x70] sm:$0xff] }
  0xd3   : > { %495 = vst.msk [vmem:[#allocation3 + $0x48] sm:$0xff] %vm284_vm0, %v479_v38  ;;  %v551_v45 = vmul.f32 0.00390625, %v535_v42  ;;  %v533_v47 = vld [vmem:[#allocation3 + $0x60] sm:$0xff]  ;;  %v407_v42 = vld [vmem:[#allocation3 + $0x8] sm:$0xff] }
  0xd4   : > { %494 = vst.msk [vmem:[#allocation3 + $0x40] sm:$0xff] %vm284_vm0, %v478_v40  ;;  %v388_v46 = vpop.xlane.xlu0 %387  ;;  %v549_v55 = vmul.f32 0.00390625, %v533_v47  ;;  %v358_v40 = vld [vmem:[#allocation2 + $0x8] sm:$0xff] }
  0xd5   : > { %v445_v48 = vpop.xlane.xlu1 %444  ;;  %v396_v49 = vadd.f32 %v388_v46, %v364_v41  ;;  %1263 = vmatprep.subr.mxu0 %v551_v45 }
  0xd6   : > { %v477_v51 = vadd.f32 %v445_v48, %v413_v44  ;;  %1264 = vmatpush3.msra.mxu0 %v551_v45  ;;  %v532_v53 = vld [vmem:[#allocation3 + $0x58] sm:$0xff] }
  0xd7   : > { %405 = vst.msk [vmem:[#allocation2 + $0x38] sm:$0xff] %vm284_vm0, %v396_v49  ;;  %1265 = vmatprep.subr.mxu0 %v550_v50  ;;  %v531_v57 = vld [vmem:[#allocation3 + $0x50] sm:$0xff]  ;;  %v548_v60 = vmul.f32 0.00390625, %v532_v53 }
  0xd8   : > { %493 = vst.msk [vmem:[#allocation3 + $0x38] sm:$0xff] %vm284_vm0, %v477_v51  ;;  %v385_v56 = vpop.xlane.xlu0 %384  ;;  %1266 = vmatpush3.msra.mxu0 %v550_v50  ;;  %v547_v1 = vmul.f32 0.00390625, %v531_v57  ;;  %v357_v50 = vld [vmem:[#allocation2] sm:$0xff] }
  0xd9   : > { %v442_v58 = vpop.xlane.xlu1 %441  ;;  %v395_v59 = vadd.f32 %v385_v56, %v363_v52  ;;  %1267 = vmatprep.subr.mxu0 %v549_v55  ;;  %v406_v52 = vld [vmem:[#allocation3] sm:$0xff] }
  0xda   : > { %v476_v61 = vadd.f32 %v442_v58, %v412_v54  ;;  %1268 = vmatpush3.msra.mxu0 %v549_v55  ;;  %v530_v63 = vld [vmem:[#allocation3 + $0x48] sm:$0xff] }
  0xdb   : > { %404 = vst.msk [vmem:[#allocation2 + $0x30] sm:$0xff] %vm284_vm0, %v395_v59  ;;  %1269 = vmatprep.subr.mxu0 %v548_v60  ;;  %v529_v3 = vld [vmem:[#allocation3 + $0x40] sm:$0xff]  ;;  %v546_v6 = vmul.f32 0.00390625, %v530_v63 }
  0xdc   : > { %492 = vst.msk [vmem:[#allocation3 + $0x30] sm:$0xff] %vm284_vm0, %v476_v61  ;;  %v382_v2 = vpop.xlane.xlu0 %381  ;;  %1270 = vmatpush3.msra.mxu0 %v548_v60  ;;  %v545_v12 = vmul.f32 0.00390625, %v529_v3 }
  0xdd   : > { %v439_v4 = vpop.xlane.xlu1 %438  ;;  %v394_v5 = vadd.f32 %v382_v2, %v362_v62  ;;  %1271 = vmatprep.subr.mxu0 %v547_v1 }
  0xde   : > { %v475_v7 = vadd.f32 %v439_v4, %v411_v0  ;;  %1272 = vmatpush3.msra.mxu0 %v547_v1  ;;  %v512_v10 = vld [vmem:[#allocation2 + $0x38] sm:$0xff] }
  0xdf   : > { %403 = vst.msk [vmem:[#allocation2 + $0x28] sm:$0xff] %vm284_vm0, %v394_v5  ;;  %1273 = vmatprep.subr.mxu0 %v546_v6  ;;  %v520_v13 = vmul.f32 0.00390625, %v512_v10  ;;  %v528_v14 = vld [vmem:[#allocation3 + $0x38] sm:$0xff] }
  0xe0   : > { %491 = vst.msk [vmem:[#allocation3 + $0x28] sm:$0xff] %vm284_vm0, %v475_v7  ;;  %v379_v15 = vpop.xlane.xlu0 %378  ;;  %1274 = vmatpush3.msra.mxu0 %v546_v6  ;;  %v544_v18 = vmul.f32 0.00390625, %v528_v14 }
  0xe1   : > { %v436_v16 = vpop.xlane.xlu1 %435  ;;  %v393_v17 = vadd.f32 %v379_v15, %v361_v8  ;;  %1275 = vmatprep.subr.mxu0 %v545_v12  ;;  %1296 = vmatprep.subr.mxu1 %v520_v13 }
  0xe2   : > { %v474_v19 = vadd.f32 %v436_v16, %v410_v11  ;;  %1276 = vmatpush3.msra.mxu0 %v545_v12  ;;  %1297 = vmatpush3.msra.mxu1 %v520_v13  ;;  %v511_v21 = vld [vmem:[#allocation2 + $0x30] sm:$0xff] }
  0xe3   : > { %402 = vst.msk [vmem:[#allocation2 + $0x20] sm:$0xff] %vm284_vm0, %v393_v17  ;;  %1277 = vmatprep.subr.mxu0 %v544_v18  ;;  %v527_v23 = vld [vmem:[#allocation3 + $0x30] sm:$0xff]  ;;  %v519_v24 = vmul.f32 0.00390625, %v511_v21  ;;  %v734_v17 = vld [vmem:[%s1979_s3 + $0x20] sm:$0xff] }
  0xe4   : > { %490 = vst.msk [vmem:[#allocation3 + $0x20] sm:$0xff] %vm284_vm0, %v474_v19  ;;  %v376_v25 = vpop.xlane.xlu0 %375  ;;  %1278 = vmatpush3.msra.mxu0 %v544_v18  ;;  %v543_v26 = vmul.f32 0.00390625, %v527_v23  ;;  %v730_v18 = vld [vmem:[%s1979_s3] sm:$0xff] }
  0xe5   : > { %v433_v27 = vpop.xlane.xlu1 %432  ;;  %v392_v28 = vadd.f32 %v376_v25, %v360_v20  ;;  %1298 = vmatprep.subr.mxu1 %v519_v24 }
  0xe6   : > { %v473_v29 = vadd.f32 %v433_v27, %v409_v22  ;;  %1279 = vmatprep.subr.mxu0 %v543_v26  ;;  %1299 = vmatpush3.msra.mxu1 %v519_v24  ;;  %v510_v31 = vld [vmem:[#allocation2 + $0x28] sm:$0xff] }
  0xe7   : > { %401 = vst.msk [vmem:[#allocation2 + $0x18] sm:$0xff] %vm284_vm0, %v392_v28  ;;  %1280 = vmatpush3.msra.mxu0 %v543_v26  ;;  %v526_v33 = vld [vmem:[#allocation3 + $0x28] sm:$0xff]  ;;  %v518_v34 = vmul.f32 0.00390625, %v510_v31  ;;  %v736_v28 = vld [vmem:[%s1979_s3 + $0x30] sm:$0xff]  ;;  %v733_v31 = vld [vmem:[%s1979_s3 + $0x18] sm:$0xff] }
  0xe8   : > { %489 = vst.msk [vmem:[#allocation3 + $0x18] sm:$0xff] %vm284_vm0, %v473_v29  ;;  %v373_v35 = vpop.xlane.xlu0 %372  ;;  %v542_v36 = vmul.f32 0.00390625, %v526_v33  ;;  %v735_v26 = vld [vmem:[%s1979_s3 + $0x28] sm:$0xff]  ;;  %v732_v29 = vld [vmem:[%s1979_s3 + $0x10] sm:$0xff] }
  0xe9   : > { %v430_v37 = vpop.xlane.xlu1 %429  ;;  %v391_v38 = vadd.f32 %v373_v35, %v359_v30  ;;  %1300 = vmatprep.subr.mxu1 %v518_v34  ;;  %v731_v27 = vld [vmem:[%s1979_s3 + $0x8] sm:$0xff]  ;;  %v737_v30 = vld [vmem:[%s1979_s3 + $0x38] sm:$0xff] }
  0xea   : > { %v472_v39 = vadd.f32 %v430_v37, %v408_v32  ;;  %1281 = vmatprep.subr.mxu0 %v542_v36  ;;  %1301 = vmatpush3.msra.mxu1 %v518_v34  ;;  %v509_v41 = vld [vmem:[#allocation2 + $0x20] sm:$0xff]  ;;  %v739_v33 = vld [vmem:[%s1979_s3 + $0x48] sm:$0xff]  ;;  %v740_v34 = vld [vmem:[%s1979_s3 + $0x50] sm:$0xff] }
  0xeb   : > { %400 = vst.msk [vmem:[#allocation2 + $0x10] sm:$0xff] %vm284_vm0, %v391_v38  ;;  %1282 = vmatpush3.msra.mxu0 %v542_v36  ;;  %v525_v43 = vld [vmem:[#allocation3 + $0x20] sm:$0xff]  ;;  %v517_v44 = vmul.f32 0.00390625, %v509_v41  ;;  %v741_v35 = vld [vmem:[%s1979_s3 + $0x58] sm:$0xff]  ;;  %v743_v37 = vld [vmem:[%s1979_s3 + $0x68] sm:$0xff] }
  0xec   : > { %488 = vst.msk [vmem:[#allocation3 + $0x10] sm:$0xff] %vm284_vm0, %v472_v39  ;;  %v370_v45 = vpop.xlane.xlu0 %369  ;;  %v541_v46 = vmul.f32 0.00390625, %v525_v43  ;;  %v738_v32 = vld [vmem:[%s1979_s3 + $0x40] sm:$0xff]  ;;  %v744_v38 = vld [vmem:[%s1979_s3 + $0x70] sm:$0xff]  ;;  %v745_v39 = vld [vmem:[%s1979_s3 + $0x78] sm:$0xff] }
  0xed   : > { %v427_v47 = vpop.xlane.xlu1 %426  ;;  %v390_v48 = vadd.f32 %v370_v45, %v358_v40  ;;  %1302 = vmatprep.subr.mxu1 %v517_v44  ;;  %v742_v36 = vld [vmem:[%s1979_s3 + $0x60] sm:$0xff] }
  0xee   : > { %v471_v49 = vadd.f32 %v427_v47, %v407_v42  ;;  %1283 = vmatprep.subr.mxu0 %v541_v46  ;;  %1303 = vmatpush3.msra.mxu1 %v517_v44  ;;  %v508_v51 = vld [vmem:[#allocation2 + $0x18] sm:$0xff] }
  0xef   : > { %399 = vst.msk [vmem:[#allocation2 + $0x8] sm:$0xff] %vm284_vm0, %v390_v48  ;;  %1284 = vmatpush3.msra.mxu0 %v541_v46  ;;  %v524_v53 = vld [vmem:[#allocation3 + $0x18] sm:$0xff]  ;;  %v516_v54 = vmul.f32 0.00390625, %v508_v51 }
  0xf0   : > { %487 = vst.msk [vmem:[#allocation3 + $0x8] sm:$0xff] %vm284_vm0, %v471_v49  ;;  %v367_v55 = vpop.xlane.xlu0 %366  ;;  %v540_v56 = vmul.f32 0.00390625, %v524_v53 }
  0xf1   : > { %v424_v57 = vpop.xlane.xlu1 %423  ;;  %v389_v58 = vadd.f32 %v367_v55, %v357_v50  ;;  %1304 = vmatprep.subr.mxu1 %v516_v54 }
  0xf2   : > { %v470_v59 = vadd.f32 %v424_v57, %v406_v52  ;;  %1285 = vmatprep.subr.mxu0 %v540_v56  ;;  %1305 = vmatpush3.msra.mxu1 %v516_v54  ;;  %v507_v60 = vld [vmem:[#allocation2 + $0x10] sm:$0xff] }
  0xf3   : > { %398 = vst.msk [vmem:[#allocation2] sm:$0xff] %vm284_vm0, %v389_v58  ;;  %1286 = vmatpush3.msra.mxu0 %v540_v56  ;;  %v523_v61 = vld [vmem:[#allocation3 + $0x10] sm:$0xff]  ;;  %v515_v62 = vmul.f32 0.00390625, %v507_v60 }
  0xf4   : > { %486 = vst.msk [vmem:[#allocation3] sm:$0xff] %vm284_vm0, %v470_v59  ;;  %v539_v63 = vmul.f32 0.00390625, %v523_v61  ;;  %v1413_v0 = vpop.permute.xlu0 %1412 }
  0xf5   : > { %1306 = vmatprep.subr.mxu1 %v515_v62  ;;  %v1415_v1 = vunpack.i.h.bf16 %v1413_v0  ;;  %v1414_v2 = vunpack.i.l.bf16 %v1413_v0  ;;  %v1418_v4 = vpop.permute.xlu1 %1417 }
  0xf6   : > { %1287 = vmatprep.subr.mxu0 %v539_v63  ;;  %1307 = vmatpush3.msra.mxu1 %v515_v62  ;;  %v506_v3 = vld [vmem:[#allocation2 + $0x8] sm:$0xff]  ;;  %v1420_v10 = vunpack.i.h.bf16 %v1418_v4  ;;  %v1419_v11 = vunpack.i.l.bf16 %v1418_v4 }
  0xf7   : > { %1288 = vmatpush3.msra.mxu0 %v539_v63  ;;  %v522_v5 = vld [vmem:[#allocation3 + $0x8] sm:$0xff]  ;;  %v514_v6 = vmul.f32 0.00390625, %v506_v3  ;;  %v570_v7 = vsel %vm569_vm1, %v1414_v2, %v1415_v1 }
  0xf8   : > { %v538_v8 = vmul.f32 0.00390625, %v522_v5  ;;  %1293 = vmatprep.mubr.f32.mxu0 %v570_v7  ;;  %v571_v16 = vsel %vm569_vm1, %v1419_v11, %v1420_v10 }
  0xf9   : > { %1308 = vmatprep.subr.mxu1 %v514_v6 }
  0xfa   : > { %1289 = vmatprep.subr.mxu0 %v538_v8  ;;  %1309 = vmatpush3.msra.mxu1 %v514_v6  ;;  %v505_v12 = vld [vmem:[#allocation2] sm:$0xff] }
  0xfb   : > { %1290 = vmatpush3.msra.mxu0 %v538_v8  ;;  %v521_v13 = vld [vmem:[#allocation3] sm:$0xff]  ;;  %v513_v14 = vmul.f32 0.00390625, %v505_v12 }
  0xfc   : > { %v537_v15 = vmul.f32 0.00390625, %v521_v13 }
  0xfd   : > { %1310 = vmatprep.subr.mxu1 %v513_v14 }
  0xfe   : > { %1291 = vmatprep.subr.mxu0 %v537_v15  ;;  %1311 = vmatpush3.msra.mxu1 %v513_v14 }
  0xff   : > { %1292 = vmatpush3.msra.mxu0 %v537_v15  ;;  %1313 = vmatmul.mubr.msk.f32.vlgmr.msra.gmra.mxu1 %vm569_vm1, %v1814_v9 }
 0x100   : > { %1294 = vmatmul.mubr.f32.vlgmr.msra.gmra.mxu0 %v571_v16  ;;  %1325 = vmatprep.mubr.msk.f32.mxu1 %vm746_vm2, %v734_v17 }
 0x101   : > { %1319 = vmatprep.mubr.msk.f32.mxu0 %vm746_vm2, %v730_v18 }
 0x1bf   : > { %v1314_v19 = vpop.f32.mrf.mxu1 }
 0x1c0   : > { %v1295_v20 = vpop.f32.mrf.mxu0 }
 0x1c1   : > { %v725_v21 = vadd.f32 %v1314_v19, %v1295_v20  ;;  %v719_v22 = vpop.f32.mrf.mxu1 }
 0x1c2   : > { %v640_v23 = vpop.f32.mrf.mxu0 }
 0x1c3   : > { %v729_v9 = vmax.f32 %v725_v21, 0.0  ;;  %v720_v24 = vadd.f32 %v719_v22, %v640_v23 }
 0x1c5   : > { %v728_v25 = vmax.f32 %v720_v24, 0.0  ;;  %1315 = vmatprep.subr.msk.mxu0 %vm795_vm3, %v729_v9  ;;  %1343 = vmatprep.subr.msk.mxu1 %vm795_vm3, %v729_v9 }
 0x1c6   : > { %1316 = vmatpush3.msk.msra.mxu0 %vm795_vm3, %v729_v9  ;;  %1345 = vmatpush3.msk.msra.mxu1 %vm795_vm3, %v729_v9 }
 0x1c7   : > { %1317 = vmatprep.subr.mxu0 %v728_v25  ;;  %1344 = vmatprep.subr.mxu1 %v728_v25 }
 0x1c8   : > { %1318 = vmatpush3.msra.mxu0 %v728_v25  ;;  %1346 = vmatpush3.msra.mxu1 %v728_v25 }
 0x1c9   : > { %1326 = vmatmul.mubr.msk.f32.vlgmr.msra.gmra.mxu1 %vm746_vm2, %v735_v26  ;;  %1320 = vmatmul.mubr.msk.f32.vlgmr.msra.gmra.mxu0 %vm746_vm2, %v731_v27 }
 0x1ca   : > { %1328 = vmatprep.mubr.msk.f32.mxu1 %vm746_vm2, %v736_v28  ;;  %1322 = vmatprep.mubr.msk.f32.mxu0 %vm746_vm2, %v732_v29 }
 0x1cd   : > { %1329 = vmatmul.mubr.msk.f32.gmra.mxu1 %vm746_vm2, %v737_v30  ;;  %1323 = vmatmul.mubr.msk.f32.gmra.mxu0 %vm746_vm2, %v733_v31 }
 0x1ce   : > { %1331 = vmatprep.mubr.msk.f32.mxu1 %vm746_vm2, %v738_v32 }
 0x1d1   : > { %1332 = vmatmul.mubr.msk.f32.gmra.mxu1 %vm746_vm2, %v739_v33 }
 0x1d2   : > { %1334 = vmatprep.mubr.msk.f32.mxu1 %vm746_vm2, %v740_v34 }
 0x1d5   : > { %1335 = vmatmul.mubr.msk.f32.gmra.mxu1 %vm746_vm2, %v741_v35 }
 0x1d6   : > { %1337 = vmatprep.mubr.msk.f32.mxu1 %vm746_vm2, %v742_v36 }
 0x1d9   : > { %1338 = vmatmul.mubr.msk.f32.gmra.mxu1 %vm746_vm2, %v743_v37 }
 0x1da   : > { %1340 = vmatprep.mubr.msk.f32.mxu1 %vm746_vm2, %v744_v38 }
 0x1dd   : > { %1341 = vmatmul.mubr.msk.f32.gmra.mxu1 %vm746_vm2, %v745_v39 }
 0x289   : > { %v1327_v40 = vpop.f32.mrf.mxu1  ;;  %v1321_v41 = vpop.f32.mrf.mxu0 }
 0x28a   : > { %v1199_v42 = vmul.f32 -1.442695, %v1327_v40  ;;  %v1195_v43 = vmul.f32 -1.442695, %v1321_v41 }
 0x28b   : > { %v885_v44 = vpop.f32.mrf.mxu1  ;;  %v865_v45 = vpop.f32.mrf.mxu0 }
 0x28c   : > { %1421 = vpow2.f32 %v1199_v42  ;;  %v1198_v46 = vmul.f32 -1.442695, %v885_v44  ;;  %v1194_v47 = vmul.f32 -1.442695, %v865_v45 }
 0x28d   : > { %v1330_v48 = vpop.f32.mrf.mxu1  ;;  %1423 = vpow2.f32 %v1195_v43  ;;  %v1324_v49 = vpop.f32.mrf.mxu0 }
 0x28e   : > { %1425 = vpow2.f32 %v1198_v46  ;;  %v1201_v50 = vmul.f32 -1.442695, %v1330_v48  ;;  %v1197_v51 = vmul.f32 -1.442695, %v1324_v49 }
 0x28f   : > { %v895_v52 = vpop.f32.mrf.mxu1  ;;  %1427 = vpow2.f32 %v1194_v47  ;;  %v875_v53 = vpop.f32.mrf.mxu0 }
 0x290   : > { %1429 = vpow2.f32 %v1201_v50  ;;  %v1200_v54 = vmul.f32 -1.442695, %v895_v52  ;;  %v1196_v56 = vmul.f32 -1.442695, %v875_v53 }
 0x291   : > { %v1333_v55 = vpop.f32.mrf.mxu1  ;;  %1431 = vpow2.f32 %v1197_v51 }
 0x292   : > { %1433 = vpow2.f32 %v1200_v54  ;;  %v1203_v57 = vmul.f32 -1.442695, %v1333_v55 }
 0x293   : > { %v905_v58 = vpop.f32.mrf.mxu1 }
 0x294   : > { %1435 = vpow2.f32 %v1203_v57  ;;  %v1202_v59 = vmul.f32 -1.442695, %v905_v58 }
 0x295   : > { %v1336_v60 = vpop.f32.mrf.mxu1  ;;  %1437 = vpow2.f32 %v1196_v56 }
 0x296   : > { %1439 = vpow2.f32 %v1202_v59  ;;  %v1205_v61 = vmul.f32 -1.442695, %v1336_v60 }
 0x297   : > { %v915_v62 = vpop.f32.mrf.mxu1 }
 0x298   : > { %1441 = vpow2.f32 %v1205_v61  ;;  %v1204_v63 = vmul.f32 -1.442695, %v915_v62 }
 0x299   : > { %v1422_v0 = vpop.eup %1421  ;;  %v1339_v1 = vpop.f32.mrf.mxu1 }
 0x29a   : > { %v1424_v2 = vpop.eup %1423  ;;  %v997_v3 = vadd.f32 1.0, %v1422_v0  ;;  %1443 = vpow2.f32 %v1204_v63  ;;  %v1207_v6 = vmul.f32 -1.442695, %v1339_v1 }
 0x29b   : > { %v1426_v4 = vpop.eup %1425  ;;  %v993_v5 = vadd.f32 1.0, %v1424_v2  ;;  %v925_v10 = vpop.f32.mrf.mxu1 }
 0x29c   : > { %v1428_v7 = vpop.eup %1427  ;;  %1445 = vrcp.f32 %v997_v3  ;;  %v996_v8 = vadd.f32 1.0, %v1426_v4  ;;  %v1206_v16 = vmul.f32 -1.442695, %v925_v10 }
 0x29d   : > { %v1430_v11 = vpop.eup %1429  ;;  %1447 = vrcp.f32 %v993_v5  ;;  %v992_v12 = vadd.f32 1.0, %v1428_v7  ;;  %v1342_v18 = vpop.f32.mrf.mxu1 }
 0x29e   : > { %v1432_v13 = vpop.eup %1431  ;;  %1449 = vrcp.f32 %v996_v8  ;;  %v999_v14 = vadd.f32 1.0, %v1430_v11  ;;  %v1209_v9 = vmul.f32 -1.442695, %v1342_v18 }
 0x29f   : > { %v1434_v15 = vpop.eup %1433  ;;  %1451 = vpow2.f32 %v1207_v6  ;;  %v995_v20 = vadd.f32 1.0, %v1432_v13  ;;  %v935_v25 = vpop.f32.mrf.mxu1 }
 0x2a0   : > { %1453 = vrcp.f32 %v999_v14  ;;  %v998_v17 = vadd.f32 1.0, %v1434_v15  ;;  %v1208_v30 = vmul.f32 -1.442695, %v935_v25 }
 0x2a1   : > { %v1436_v19 = vpop.eup %1435  ;;  %1455 = vrcp.f32 %v992_v12 }
 0x2a2   : > { %v1438_v21 = vpop.eup %1437  ;;  %1457 = vrcp.f32 %v998_v17  ;;  %v1001_v22 = vadd.f32 1.0, %v1436_v19 }
 0x2a3   : > { %v1440_v23 = vpop.eup %1439  ;;  %1459 = vpow2.f32 %v1206_v16  ;;  %v994_v27 = vadd.f32 1.0, %v1438_v21 }
 0x2a4   : > { %1461 = vrcp.f32 %v1001_v22  ;;  %v1000_v24 = vadd.f32 1.0, %v1440_v23 }
 0x2a5   : > { %v1442_v26 = vpop.eup %1441  ;;  %1463 = vrcp.f32 %v995_v20 }
 0x2a6   : > { %1465 = vrcp.f32 %v1000_v24  ;;  %v1003_v28 = vadd.f32 1.0, %v1442_v26 }
 0x2a7   : > { %v1444_v29 = vpop.eup %1443  ;;  %1467 = vpow2.f32 %v1209_v9 }
 0x2a8   : > { %1469 = vrcp.f32 %v1003_v28  ;;  %v1002_v31 = vadd.f32 1.0, %v1444_v29 }
 0x2a9   : > { %v1446_v32 = vpop.eup %1445  ;;  %1471 = vrcp.f32 %v994_v27 }
 0x2aa   : > { %v1448_v33 = vpop.eup %1447  ;;  %1045 = vst.msk [vmem:[%s1924_s12 + $0x28] sm:$0xff] %vm284_vm0, %v1446_v32  ;;  %1473 = vrcp.f32 %v1002_v31 }
 0x2ab   : > { %v1450_v34 = vpop.eup %1449  ;;  %1041 = vst.msk [vmem:[%s1924_s12 + $0x8] sm:$0xff] %vm284_vm0, %v1448_v33  ;;  %1475 = vpow2.f32 %v1208_v30 }
 0x2ac   : > { %v1452_v35 = vpop.eup %1451  ;;  %1044 = vst.msk [vmem:[%s1924_s12 + $0x20] sm:$0xff] %vm284_vm0, %v1450_v34 }
 0x2ad   : > { %v1454_v36 = vpop.eup %1453  ;;  %v1005_v37 = vadd.f32 1.0, %v1452_v35 }
 0x2ae   : > { %v1456_v38 = vpop.eup %1455  ;;  %1047 = vst.msk [vmem:[%s1924_s12 + $0x38] sm:$0xff] %vm284_vm0, %v1454_v36 }
 0x2af   : > { %v1458_v39 = vpop.eup %1457  ;;  %1477 = vrcp.f32 %v1005_v37  ;;  %1040 = vst.msk [vmem:[%s1924_s12] sm:$0xff] %vm284_vm0, %v1456_v38 }
 0x2b0   : > { %v1460_v40 = vpop.eup %1459  ;;  %1046 = vst.msk [vmem:[%s1924_s12 + $0x30] sm:$0xff] %vm284_vm0, %v1458_v39 }
 0x2b1   : > { %v1462_v41 = vpop.eup %1461  ;;  %v1004_v42 = vadd.f32 1.0, %v1460_v40 }
 0x2b2   : > { %v1464_v43 = vpop.eup %1463  ;;  %1049 = vst.msk [vmem:[%s1924_s12 + $0x48] sm:$0xff] %vm284_vm0, %v1462_v41 }
 0x2b3   : > { %v1466_v44 = vpop.eup %1465  ;;  %1479 = vrcp.f32 %v1004_v42  ;;  %1043 = vst.msk [vmem:[%s1924_s12 + $0x18] sm:$0xff] %vm284_vm0, %v1464_v43 }
 0x2b4   : > { %v1468_v45 = vpop.eup %1467  ;;  %1048 = vst.msk [vmem:[%s1924_s12 + $0x40] sm:$0xff] %vm284_vm0, %v1466_v44 }
 0x2b5   : > { %v1470_v46 = vpop.eup %1469  ;;  %v1007_v47 = vadd.f32 1.0, %v1468_v45 }
 0x2b6   : > { %v1472_v48 = vpop.eup %1471  ;;  %1051 = vst.msk [vmem:[%s1924_s12 + $0x58] sm:$0xff] %vm284_vm0, %v1470_v46 }
 0x2b7   : > { %v1474_v49 = vpop.eup %1473  ;;  %1481 = vrcp.f32 %v1007_v47  ;;  %1042 = vst.msk [vmem:[%s1924_s12 + $0x10] sm:$0xff] %vm284_vm0, %v1472_v48 }
 0x2b8   : > { %v1476_v50 = vpop.eup %1475  ;;  %1050 = vst.msk [vmem:[%s1924_s12 + $0x50] sm:$0xff] %vm284_vm0, %v1474_v49 }
 0x2b9   : > { %v1006_v51 = vadd.f32 1.0, %v1476_v50 }
 0x2bb   : > { %1483 = vrcp.f32 %v1006_v51 }
 0x2bc   : > { %v1478_v52 = vpop.eup %1477 }
 0x2bd   : > { %1053 = vst.msk [vmem:[%s1924_s12 + $0x68] sm:$0xff] %vm284_vm0, %v1478_v52 }
 0x2c0   : > { %v1480_v53 = vpop.eup %1479 }
 0x2c1   : > { %1052 = vst.msk [vmem:[%s1924_s12 + $0x60] sm:$0xff] %vm284_vm0, %v1480_v53 }
 0x2c4   : > { %v1482_v54 = vpop.eup %1481 }
 0x2c5   : > { %1055 = vst.msk [vmem:[%s1924_s12 + $0x78] sm:$0xff] %vm284_vm0, %v1482_v54 }
 0x2c8   : > { %v1484_v55 = vpop.eup %1483 }
 0x2c9   : > { %1054 = vst.msk [vmem:[%s1924_s12 + $0x70] sm:$0xff] %vm284_vm0, %v1484_v55 }
 0x2ca PF: > { %s20_s20 = sadd.s32 1, %s1595_s20   ;;  %s1985_s15 = smov %s1579_s16 }
 0x2cb   : > { %p17_p9 = scmp.ge.s32.totalorder %s20_s20, 4   ;;  %s1986_s16 = smov %s1583_s17 }
 0x2cc   : > { %s1987_s17 = smov %s1677_s27  ;;  %s1988_s18 = smov %s1591_s19 }
 0x2cd   : > { %s1989_s19 = smov %s1991_s22  ;;  %19 = sbr.rel (!%p17_p9) target bundleno = 6 (0x6), region = 97 }
 0x2d2   :  { %1077 = vsyncpa [#allocation5], 1 }
 0x2d3   :  { %1079 = vsyncpa [#allocation5 + $0x1], 1 }
 0x2d4   :  { %1080 = vsyncpa [#allocation7], 1 }
 0x2d5   :  { %1082 = vsyncpa [#allocation7 + $0x1], 1 }

</bundles_post_ra>
